<compile_context>
chip_gen: v5e
topology: v5e:2x2
jax: 0.10.0
libtpu: 0.0.40
codegen_flags: <defaults>
</compile_context>

<pallas_src>
import functools

import numpy as np
import jax
import jax.numpy as jnp
from jax.experimental import pallas as pl
from jax.experimental.pallas import tpu as pltpu


def compute_content_matrix(T, L, C):
    """Faithful numpy port of the reference compute_content_matrix."""
    Wc = np.zeros((L, L, C, T), dtype=np.float32)
    for i in range(L):
        for j in range(i, L):
            window_size = j - i + 1
            window_start, num_frames = i * (T // L), window_size * (T // L)
            clip_size = max(1, num_frames // C)
            for c in range(min(C, num_frames)):
                clip_start = window_start + c * clip_size
                Wc[i, j, c, clip_start:clip_start + clip_size] = 1.0 / clip_size
    return Wc


def _round_up(x, m):
    return (x + m - 1) // m * m


def _cdiv(a, b):
    return (a + b - 1) // b


# ---------------------------------------------------------------------------
# Cached, padded stacked weight matrix  W = [Wc_flat ; Wm ; Wb]
#   Wc_flat : (L*L*C, T) -> fc rows
#   Wm      : (L*L,  T)  -> fm rows  (mean over the C clips folded into W)
#   Wb      : (L,    T)  -> fb rows  (AvgPool1d(T//L, stride=T//L))
# ---------------------------------------------------------------------------
_W_CACHE = {}


def _stacked_weights(T, L, C, compute_dtype):
    key = (T, L, C, jnp.dtype(compute_dtype).name)
    if key in _W_CACHE:
        return _W_CACHE[key]

    LL, LLC = L * L, L * L * C
    Wc = compute_content_matrix(T, L, C)                       # (L,L,C,T) f32
    Wc_flat = Wc.reshape(LLC, T)
    Wm = Wc.mean(axis=2).reshape(LL, T)                        # fm = mean_c fc
    Wb = np.repeat(np.eye(L, dtype=np.float32), T // L, axis=1) * (float(L) / T)
    W = np.concatenate([Wc_flat, Wm, Wb], axis=0)              # (R, T)
    R = LLC + LL + L

    esz = jnp.dtype(compute_dtype).itemsize
    sub = 16 if esz == 2 else 8                                # sublane packing

    # Row tile: rebalance so Rpad overshoot stays small, keep sublane aligned.
    target_rt = 512
    num_r = max(1, _cdiv(R, target_rt))
    rt = _round_up(_cdiv(R, num_r), sub)
    Rpad = num_r * rt

    # Contraction dim: pad only to the sublane multiple (no 128 inflation).
    Kpad = _round_up(T, sub)

    W_pad = np.zeros((Rpad, Kpad), dtype=np.float32)
    W_pad[:R, :T] = W
    W_dev = jnp.asarray(W_pad, dtype=compute_dtype)

    meta = dict(R=R, LLC=LLC, LL=LL, rt=rt, Rpad=Rpad, Kpad=Kpad, num_r=num_r)
    _W_CACHE[key] = (W_dev, meta)
    return _W_CACHE[key]


def _vmem_limit_bytes(required):
    """~75% of physical VMEM (v5e/v6e ~96 MiB, v7x ~48 MiB), never < required."""
    cap = 128 << 20
    try:
        info = pltpu.get_tpu_info()
        cap = int(getattr(info, "vmem_capacity_bytes", cap))
    except Exception:
        pass
    ceiling = (3 * cap) // 4
    limit = max(32 << 20, 4 * required, required + (2 << 20))
    return int(min(limit, max(ceiling, required + (2 << 20))))


def _proposal_matmul_kernel(w_ref, f_ref, o_ref):
    # One lane-dense MXU matmul per (row-tile, lane-tile) grid cell:
    #   (rt, Kpad) @ (Kpad, Nt) -> (rt, Nt), f32 accumulation.
    o_ref[...] = jnp.dot(w_ref[...], f_ref[...],
                         preferred_element_type=jnp.float32)


def proposal_generation(f, moment_mask, *, T, L, C,
                        compute_dtype=jnp.bfloat16, lane_tile=1024):
    B, T_, D = f.shape
    assert T_ == T and T % L == 0

    W, meta = _stacked_weights(T, L, C, compute_dtype)
    R, LLC, LL = meta["R"], meta["LLC"], meta["LL"]
    rt, Rpad, Kpad, num_r = meta["rt"], meta["Rpad"], meta["Kpad"], meta["num_r"]

    # ---- fold batch into lanes:  f_all[t, b*D + d] = f[b, t, d] ----
    N = B * D
    Nt = _round_up(min(lane_tile, _round_up(N, 128)), 128)
    Npad = _round_up(_round_up(N, 128), Nt)
    num_n = Npad // Nt

    f_all = jnp.transpose(f, (1, 0, 2)).reshape(T, N).astype(compute_dtype)
    f_all = jnp.pad(f_all, ((0, Kpad - T), (0, Npad - N)))

    esz_in = jnp.dtype(compute_dtype).itemsize
    esz_out = 4
    cost = pl.CostEstimate(
        flops=2 * Rpad * Kpad * Npad,
        transcendentals=0,
        bytes_accessed=esz_in * (Rpad * Kpad + Kpad * Npad)
        + esz_out * Rpad * Npad)

    # Double-buffered W / f / out tiles (bounded, independent of B*D).
    tile_bytes = 2 * (rt * Kpad * esz_in + Kpad * Nt * esz_in
                      + rt * Nt * esz_out)
    vmem_limit = _vmem_limit_bytes(tile_bytes)

    out = pl.pallas_call(
        _proposal_matmul_kernel,
        out_shape=jax.ShapeDtypeStruct((Rpad, Npad), jnp.float32),
        grid_spec=pltpu.PrefetchScalarGridSpec(
            num_scalar_prefetch=0,
            grid=(num_r, num_n),
            in_specs=[
                pl.BlockSpec((rt, Kpad), lambda r, n: (r, 0)),   # W row tile (n-invariant)
                pl.BlockSpec((Kpad, Nt), lambda r, n: (0, n)),   # f lane tile (r-invariant)
            ],
            out_specs=pl.BlockSpec((rt, Nt), lambda r, n: (r, n)),
        ),
        compiler_params=pltpu.CompilerParams(
            dimension_semantics=("parallel", "parallel"),
            vmem_limit_bytes=vmem_limit),
        cost_estimate=cost,
    )(W, f_all)

    # ---- cheap unpack / mask / layout in the wrapper (fused by XLA into the
    #      unavoidable transpose passes) ----
    out = out[:R, :N].reshape(R, B, D)
    mask = moment_mask.astype(out.dtype)

    fc = jnp.transpose(out[:LLC].reshape(L, L, C, B, D), (3, 0, 1, 2, 4))
    fc = fc * mask[:, :, :, None, None]                         # (B, L, L, C, D)

    fm = jnp.transpose(out[LLC:LLC + LL].reshape(L, L, B, D), (2, 0, 1, 3))
    fm = fm * mask[:, :, :, None]                               # (B, L, L, D)

    fb = jnp.transpose(out[LLC + LL:R].reshape(L, B, D), (1, 0, 2))  # (B, L, D)
    return fc, fm, fb


if __name__ == "__main__":
    # Small shapes consistent with the module (T divisible by L, C <= T//L).
    T, L, C = 16, 4, 2
    B, D = 2, 32

    key = jax.random.PRNGKey(0)
    kf, km = jax.random.split(key)
    f = jax.random.normal(kf, (B, T, D), dtype=jnp.float32)
    moment_mask = jax.random.bernoulli(km, 0.7, (B, L, L)).astype(jnp.float32)

    pg = jax.jit(functools.partial(proposal_generation, T=T, L=L, C=C))
    fc, fm, fb = pg(f, moment_mask)
    jax.block_until_ready((fc, fm, fb))

    # Pure-JAX f32 reference (mirrors the PyTorch forward exactly).
    Wc = jnp.asarray(compute_content_matrix(T, L, C))
    fc_ref = jnp.einsum('lmct,btd->blmcd', Wc, f) * moment_mask[:, :, :, None, None]
    fm_ref = jnp.mean(fc_ref, axis=3)
    fb_ref = jnp.mean(f.reshape(B, L, T // L, D), axis=2)

    assert fc.shape == (B, L, L, C, D)
    assert fm.shape == (B, L, L, D)
    assert fb.shape == (B, L, D)
    # bf16 matmul inputs (f32 accumulation) -> relaxed tolerances vs f32 ref.
    np.testing.assert_allclose(np.asarray(fc), np.asarray(fc_ref), atol=5e-2, rtol=5e-2)
    np.testing.assert_allclose(np.asarray(fm), np.asarray(fm_ref), atol=5e-2, rtol=5e-2)
    np.testing.assert_allclose(np.asarray(fb), np.asarray(fb_ref), atol=5e-2, rtol=5e-2)

    print("KERNEL_OK")
</pallas_src>

<mosaic_0001>
module attributes {stable_mosaic.version = 11 : i64} {
  func.func @_proposal_matmul_kernel(%arg0: i32, %arg1: i32, %arg2: memref<64x16xbf16, #tpu.memory_space<vmem>>, %arg3: memref<16x128xbf16, #tpu.memory_space<vmem>>, %arg4: memref<64x128xf32, #tpu.memory_space<vmem>>) attributes {dimension_semantics = [#tpu.dimension_semantics<parallel>, #tpu.dimension_semantics<parallel>], iteration_bounds = array<i64: 1, 1>, scalar_prefetch = 0 : i64, scratch_operands = 0 : i64, tpu.core_type = #tpu.core_type<tc>, window_params = [{transform_indices = @transform_0, window_bounds = array<i64: 64, 16>}, {transform_indices = @transform_1, window_bounds = array<i64: 16, 128>}, {transform_indices = @transform_2, window_bounds = array<i64: 64, 128>}]} {
    %c0 = arith.constant 0 : index
    %c0_0 = arith.constant 0 : index
    %0 = vector.load %arg2[%c0, %c0_0] : memref<64x16xbf16, #tpu.memory_space<vmem>>, vector<64x16xbf16>
    %c0_1 = arith.constant 0 : index
    %c0_2 = arith.constant 0 : index
    %1 = vector.load %arg3[%c0_1, %c0_2] : memref<16x128xbf16, #tpu.memory_space<vmem>>, vector<16x128xbf16>
    %cst = arith.constant dense<0.000000e+00> : vector<64x128xf32>
    %2 = tpu.matmul %0, %1, %cst {dimension_numbers = #tpu.dot_dimension_numbers<[1], [0], [0], [1], [0, 0, 1, 1], [], []>} : vector<64x16xbf16>, vector<16x128xbf16>, vector<64x128xf32> -> vector<64x128xf32>
    %c0_3 = arith.constant 0 : index
    %c0_4 = arith.constant 0 : index
    %3 = vector.load %arg4[%c0_3, %c0_4] : memref<64x128xf32, #tpu.memory_space<vmem>>, vector<64x128xf32>
    tpu.vector_store %arg4[%c0_3, %c0_4], %2 {strides = array<i32>} : memref<64x128xf32, #tpu.memory_space<vmem>>, vector<64x128xf32>,
    return
  }
  func.func @transform_0(%arg0: i32, %arg1: i32) -> (i32, i32) {
    %c0_i32 = arith.constant 0 : i32
    %c0_i32_0 = arith.constant 0 : i32
    return %arg0, %c0_i32 : i32, i32
  }
  func.func @transform_1(%arg0: i32, %arg1: i32) -> (i32, i32) {
    %c0_i32 = arith.constant 0 : i32
    %c0_i32_0 = arith.constant 0 : i32
    return %c0_i32, %arg1 : i32, i32
  }
  func.func @transform_2(%arg0: i32, %arg1: i32) -> (i32, i32) {
    %c0_i32 = arith.constant 0 : i32
    return %arg0, %arg1 : i32, i32
  }
}

</mosaic_0001>

<bundles_post_ra>
// kernel: proposal_generation.1
= control target key start
LH: loop header
LB: loop body
LE: loop exit
PB: predicated region body
PF: predicated region fallthrough
CT: control target
= control target key end

     0   :  { %vm48_vm0 = vcmask 130048   ;;  %s188_s1 = inlined_call_operand.vmem [shape: bf16[16,128], index: 1, kind: input, shape index: {}]   ;;  %s189_s0 = inlined_call_operand.vmem [shape: bf16[64,16], index: 0, kind: input, shape index: {}]   ;;  %s190_s2 = inlined_call_operand.vmem [shape: f32[64,128], index: 2, kind: output, shape index: {}]  }
   0x1   :  { %v130_v0 = vld [vmem:[%s188_s1] sm:$0xff]  ;;  %v127_v2 = vld [vmem:[%s189_s0 + $0x8] sm:$0xff]  ;;  %v128_v3 = vld [vmem:[%s189_s0 + $0x10] sm:$0xff] }
   0x2   :  { %v126_v1 = vld [vmem:[%s189_s0] sm:$0xff]  ;;  %68 = vmatpush.bf16.msra.mxu0 %v130_v0  ;;  %131 = vmatpush.bf16.msra.mxu1 %v130_v0  ;;  %v129_v4 = vld [vmem:[%s189_s0 + $0x18] sm:$0xff] }
   0x3   :  { %132 = vmatpush.bf16.msra.mxu2 %v130_v0  ;;  %133 = vmatpush.bf16.msra.mxu3 %v130_v0 }
   0x5   :  { %122 = vmatmul.msk.bf16.vlgmr.msra.gmra.mxu0 %vm48_vm0, %v126_v1  ;;  %123 = vmatmul.msk.bf16.vlgmr.msra.gmra.mxu1 %vm48_vm0, %v127_v2 }
   0x6   :  { %124 = vmatmul.msk.bf16.vlgmr.msra.gmra.mxu2 %vm48_vm0, %v128_v3  ;;  %125 = vmatmul.msk.bf16.vlgmr.msra.gmra.mxu3 %vm48_vm0, %v129_v4 }
  0x82   :  { %v70_v5 = vpop.f32.mrf.mxu0  ;;  %v75_v6 = vpop.f32.mrf.mxu1 }
  0x83   :  { %90 = vst [vmem:[%s190_s2] sm:$0xff] %v70_v5 }
  0x84   :  { %92 = vst [vmem:[%s190_s2 + $0x10] sm:$0xff] %v75_v6 }
  0x89   :  { %v80_v7 = vpop.f32.mrf.mxu2  ;;  %v85_v8 = vpop.f32.mrf.mxu3 }
  0x8a   :  { %94 = vst [vmem:[%s190_s2 + $0x20] sm:$0xff] %v80_v7  ;;  %v72_v9 = vpop.f32.mrf.mxu0  ;;  %v77_v10 = vpop.f32.mrf.mxu1 }
  0x8b   :  { %96 = vst [vmem:[%s190_s2 + $0x30] sm:$0xff] %v85_v8 }
  0x8c   :  { %91 = vst [vmem:[%s190_s2 + $0x8] sm:$0xff] %v72_v9 }
  0x8d   :  { %93 = vst [vmem:[%s190_s2 + $0x18] sm:$0xff] %v77_v10 }
  0x91   :  { %v82_v11 = vpop.f32.mrf.mxu2  ;;  %v87_v12 = vpop.f32.mrf.mxu3 }
  0x92   :  { %95 = vst [vmem:[%s190_s2 + $0x28] sm:$0xff] %v82_v11 }
  0x93   :  { %97 = vst [vmem:[%s190_s2 + $0x38] sm:$0xff] %v87_v12 }

</bundles_post_ra>
